<compile_context>
chip_gen: v5e
topology: v5e:2x2
jax: 0.10.0
libtpu: 0.0.40
codegen_flags: <defaults>
</compile_context>

<pallas_src>
import jax
import jax.numpy as jnp
from jax.experimental import pallas as pl
from jax.experimental.pallas import tpu as pltpu


def _round_up(n, m):
    return ((n + m - 1) // m) * m


def actor_kernel(x_ref, w1_ref, b1_ref, w2_ref, b2_ref, out_ref):
    # fc1: bf16 MXU matmul, f32 accumulate; bias + ReLU in f32 on the VPU.
    h = jnp.dot(x_ref[...], w1_ref[...], preferred_element_type=jnp.float32)
    h = jnp.maximum(h + b1_ref[...], 0.0)

    # action_head: cast hidden activations to bf16 for the MXU, accumulate f32.
    logits = jnp.dot(h.astype(jnp.bfloat16), w2_ref[...],
                     preferred_element_type=jnp.float32)
    logits = logits + b2_ref[...]

    # Numerically-stable softmax over the feature (lane) axis, all in f32.
    m = jnp.max(logits, axis=-1, keepdims=True)
    e = jnp.exp(logits - m)
    denom = jnp.sum(e, axis=-1, keepdims=True)
    # NOTE: output last dim (num_output=8 < 128) means masked stores; amortized by
    # the large TM row block. Only restructure if the store slot ever binds.
    out_ref[...] = (e * pl.reciprocal(denom, approx=True)).astype(out_ref.dtype)


def actor_forward(x, w1, b1, w2, b2, *, block_rows=512):
    """x:[B,num_input] f32, w1:[num_input,node_num], b1:[1,node_num],
    w2:[node_num,num_output], b2:[1,num_output] -> action probs [B,num_output] f32."""
    B, num_input = x.shape
    node_num = w1.shape[1]
    num_output = w2.shape[1]

    # Pad hidden dim to a full lane width (128). Zero-padded hidden units are inert:
    # ReLU(x @ 0 + 0) = 0 and contributes 0 to the logits, so softmax is unaffected.
    H = _round_up(node_num, 128)
    if H != node_num:
        w1 = jnp.pad(w1, ((0, 0), (0, H - node_num)))
        b1 = jnp.pad(b1, ((0, 0), (0, H - node_num)))
        w2 = jnp.pad(w2, ((0, H - node_num), (0, 0)))

    # Batch tiling: rows-per-step is a multiple of 8 (sublane); pad B up to a tile.
    tm = min(_round_up(block_rows, 8), _round_up(max(B, 1), 8))
    Bp = _round_up(B, tm)
    if Bp != B:
        x = jnp.pad(x, ((0, Bp - B), (0, 0)))

    # bf16 matmul operands (halves HBM traffic for x, the dominant stream at large B);
    # biases and all accumulation/elementwise stay f32.
    x_bf = x.astype(jnp.bfloat16)
    w1_bf = w1.astype(jnp.bfloat16)
    w2_bf = w2.astype(jnp.bfloat16)

    grid = (Bp // tm,)
    cost = pl.CostEstimate(
        flops=2 * Bp * (num_input * H + H * num_output),
        transcendentals=Bp * (num_output + 1),
        bytes_accessed=(Bp * num_input * 2 + Bp * num_output * 4
                        + num_input * H * 2 + H * 4
                        + H * num_output * 2 + num_output * 4),
    )

    out = pl.pallas_call(
        actor_kernel,
        out_shape=jax.ShapeDtypeStruct((Bp, num_output), jnp.float32),
        grid_spec=pltpu.PrefetchScalarGridSpec(
            num_scalar_prefetch=0,
            grid=grid,
            in_specs=[
                pl.BlockSpec((tm, num_input), lambda i: (i, 0)),   # x tile per step
                pl.BlockSpec((num_input, H), lambda i: (0, 0)),    # weights resident
                pl.BlockSpec((1, H), lambda i: (0, 0)),            # b1 resident
                pl.BlockSpec((H, num_output), lambda i: (0, 0)),   # w2 resident
                pl.BlockSpec((1, num_output), lambda i: (0, 0)),   # b2 resident
            ],
            out_specs=pl.BlockSpec((tm, num_output), lambda i: (i, 0)),
        ),
        compiler_params=pltpu.CompilerParams(
            dimension_semantics=("parallel",)),    # megacore sharding on v7x
        cost_estimate=cost,
    )(x_bf, w1_bf, b1, w2_bf, b2)
    return out[:B]


def init_actor_params(key, num_input, num_output, node_num=100):
    # Deterministic init mimicking nn.Linear's uniform(-1/sqrt(fan_in), 1/sqrt(fan_in)).
    k1, k2, k3, k4 = jax.random.split(key, 4)
    lim1 = 1.0 / jnp.sqrt(jnp.float32(num_input))
    lim2 = 1.0 / jnp.sqrt(jnp.float32(node_num))
    # Stored as [in, out] (transpose of PyTorch's [out, in]) so the kernel does x @ W.
    w1 = jax.random.uniform(k1, (num_input, node_num), jnp.float32, -lim1, lim1)
    b1 = jax.random.uniform(k2, (1, node_num), jnp.float32, -lim1, lim1)
    w2 = jax.random.uniform(k3, (node_num, num_output), jnp.float32, -lim2, lim2)
    b2 = jax.random.uniform(k4, (1, num_output), jnp.float32, -lim2, lim2)
    return w1, b1, w2, b2


if __name__ == "__main__":
    num_input, num_output, node_num = 32, 8, 100
    batch = 4

    key = jax.random.PRNGKey(0)
    kx, kp = jax.random.split(key)
    x = jax.random.normal(kx, (batch, num_input), jnp.float32)
    w1, b1, w2, b2 = init_actor_params(kp, num_input, num_output, node_num)

    out = actor_forward(x, w1, b1, w2, b2)
    jax.block_until_ready(out)

    # Pure-JAX f32 reference of the same forward pass (kernel uses bf16 matmul
    # operands, so the tolerance is relaxed accordingly).
    h_ref = jnp.maximum(x @ w1 + b1, 0.0)
    ref = jax.nn.softmax(h_ref @ w2 + b2, axis=1)
    assert out.shape == (batch, num_output)
    assert jnp.allclose(out, ref, atol=2e-2), "mismatch vs reference"
    assert jnp.allclose(jnp.sum(out, axis=1), 1.0, atol=5e-3)

    print("KERNEL_OK")
</pallas_src>

<mosaic_0001>
module attributes {stable_mosaic.version = 11 : i64} {
  func.func @actor_kernel(%arg0: i32, %arg1: memref<8x32xbf16, #tpu.memory_space<vmem>>, %arg2: memref<32x128xbf16, #tpu.memory_space<vmem>>, %arg3: memref<1x128xf32, #tpu.memory_space<vmem>>, %arg4: memref<128x8xbf16, #tpu.memory_space<vmem>>, %arg5: memref<1x8xf32, #tpu.memory_space<vmem>>, %arg6: memref<8x8xf32, #tpu.memory_space<vmem>>) attributes {dimension_semantics = [#tpu.dimension_semantics<parallel>], iteration_bounds = array<i64: 1>, scalar_prefetch = 0 : i64, scratch_operands = 0 : i64, tpu.core_type = #tpu.core_type<tc>, window_params = [{transform_indices = @transform_0, window_bounds = array<i64: 8, 32>}, {pipeline_mode = #tpu.pipeline_mode<synchronous>, transform_indices = @transform_1, window_bounds = array<i64: 32, 128>}, {pipeline_mode = #tpu.pipeline_mode<synchronous>, transform_indices = @transform_2, window_bounds = array<i64: 1, 128>}, {pipeline_mode = #tpu.pipeline_mode<synchronous>, transform_indices = @transform_3, window_bounds = array<i64: 128, 8>}, {pipeline_mode = #tpu.pipeline_mode<synchronous>, transform_indices = @transform_4, window_bounds = array<i64: 1, 8>}, {transform_indices = @transform_5, window_bounds = array<i64: 8, 8>}]} {
    %c0 = arith.constant 0 : index
    %c0_0 = arith.constant 0 : index
    %0 = vector.load %arg1[%c0, %c0_0] : memref<8x32xbf16, #tpu.memory_space<vmem>>, vector<8x32xbf16>
    %c0_1 = arith.constant 0 : index
    %c0_2 = arith.constant 0 : index
    %1 = vector.load %arg2[%c0_1, %c0_2] : memref<32x128xbf16, #tpu.memory_space<vmem>>, vector<32x128xbf16>
    %cst = arith.constant dense<0.000000e+00> : vector<8x128xf32>
    %2 = tpu.matmul %0, %1, %cst {dimension_numbers = #tpu.dot_dimension_numbers<[1], [0], [0], [1], [0, 0, 1, 1], [], []>} : vector<8x32xbf16>, vector<32x128xbf16>, vector<8x128xf32> -> vector<8x128xf32>
    %c0_3 = arith.constant 0 : index
    %c0_4 = arith.constant 0 : index
    %3 = vector.load %arg3[%c0_3, %c0_4] : memref<1x128xf32, #tpu.memory_space<vmem>>, vector<1x128xf32>
    %4 = vector.broadcast %3 : vector<1x128xf32> to vector<8x128xf32>
    %5 = arith.addf %2, %4 : vector<8x128xf32>
    %cst_5 = arith.constant 0.000000e+00 : f32
    %6 = vector.broadcast %cst_5 : f32 to vector<8x128xf32>
    %7 = arith.maximumf %5, %6 : vector<8x128xf32>
    %8 = arith.truncf %7 : vector<8x128xf32> to vector<8x128xbf16>
    %c0_6 = arith.constant 0 : index
    %c0_7 = arith.constant 0 : index
    %9 = vector.load %arg4[%c0_6, %c0_7] : memref<128x8xbf16, #tpu.memory_space<vmem>>, vector<128x8xbf16>
    %cst_8 = arith.constant dense<0.000000e+00> : vector<8x8xf32>
    %10 = tpu.matmul %8, %9, %cst_8 {dimension_numbers = #tpu.dot_dimension_numbers<[1], [0], [0], [1], [0, 0, 1, 1], [], []>} : vector<8x128xbf16>, vector<128x8xbf16>, vector<8x8xf32> -> vector<8x8xf32>
    %c0_9 = arith.constant 0 : index
    %c0_10 = arith.constant 0 : index
    %11 = vector.load %arg5[%c0_9, %c0_10] : memref<1x8xf32, #tpu.memory_space<vmem>>, vector<1x8xf32>
    %12 = vector.broadcast %11 : vector<1x8xf32> to vector<8x8xf32>
    %13 = arith.addf %10, %12 : vector<8x8xf32>
    %cst_11 = arith.constant dense<0xFF800000> : vector<8xf32>
    %14 = vector.multi_reduction <maximumf>, %13, %cst_11 [1] : vector<8x8xf32> to vector<8xf32>
    %15 = vector.shape_cast %14 : vector<8xf32> to vector<8x1xf32>
    %16 = vector.broadcast %15 : vector<8x1xf32> to vector<8x8xf32>
    %17 = arith.subf %13, %16 : vector<8x8xf32>
    %18 = math.exp %17 : vector<8x8xf32>
    %cst_12 = arith.constant dense<0.000000e+00> : vector<8xf32>
    %19 = vector.multi_reduction <add>, %18, %cst_12 [1] : vector<8x8xf32> to vector<8xf32>
    %20 = vector.shape_cast %19 : vector<8xf32> to vector<8x1xf32>
    %21 = tpu.reciprocal %20 {approx = true} : vector<8x1xf32> -> vector<8x1xf32>
    %22 = vector.broadcast %21 : vector<8x1xf32> to vector<8x8xf32>
    %23 = arith.mulf %18, %22 : vector<8x8xf32>
    %c0_13 = arith.constant 0 : index
    %c0_14 = arith.constant 0 : index
    %24 = vector.load %arg6[%c0_13, %c0_14] : memref<8x8xf32, #tpu.memory_space<vmem>>, vector<8x8xf32>
    tpu.vector_store %arg6[%c0_13, %c0_14], %23 {strides = array<i32>} : memref<8x8xf32, #tpu.memory_space<vmem>>, vector<8x8xf32>,
    return
  }
  func.func @transform_0(%arg0: i32) -> (i32, i32) {
    %c0_i32 = arith.constant 0 : i32
    %c0_i32_0 = arith.constant 0 : i32
    return %arg0, %c0_i32 : i32, i32
  }
  func.func @transform_1(%arg0: i32) -> (i32, i32) {
    %c0_i32 = arith.constant 0 : i32
    %c0_i32_0 = arith.constant 0 : i32
    %c0_i32_1 = arith.constant 0 : i32
    return %c0_i32, %c0_i32_0 : i32, i32
  }
  func.func @transform_2(%arg0: i32) -> (i32, i32) {
    %c0_i32 = arith.constant 0 : i32
    %c0_i32_0 = arith.constant 0 : i32
    %c0_i32_1 = arith.constant 0 : i32
    return %c0_i32, %c0_i32_0 : i32, i32
  }
  func.func @transform_3(%arg0: i32) -> (i32, i32) {
    %c0_i32 = arith.constant 0 : i32
    %c0_i32_0 = arith.constant 0 : i32
    %c0_i32_1 = arith.constant 0 : i32
    return %c0_i32, %c0_i32_0 : i32, i32
  }
  func.func @transform_4(%arg0: i32) -> (i32, i32) {
    %c0_i32 = arith.constant 0 : i32
    %c0_i32_0 = arith.constant 0 : i32
    %c0_i32_1 = arith.constant 0 : i32
    return %c0_i32, %c0_i32_0 : i32, i32
  }
  func.func @transform_5(%arg0: i32) -> (i32, i32) {
    %c0_i32 = arith.constant 0 : i32
    %c0_i32_0 = arith.constant 0 : i32
    return %arg0, %c0_i32 : i32, i32
  }
}

</mosaic_0001>

<bundles_post_ra>
// kernel: tpu_custom_call.1
= control target key start
LH: loop header
LB: loop body
LE: loop exit
PB: predicated region body
PF: predicated region fallthrough
CT: control target
= control target key end

     0   :  { %s332_s0 = inlined_call_operand.vmem [shape: bf16[8,32], index: 0, kind: input, shape index: {}]   ;;  %s333_s1 = inlined_call_operand.vmem [shape: bf16[32,128], index: 1, kind: input, shape index: {}]   ;;  %s334_s2 = inlined_call_operand.vmem [shape: f32[1,128], index: 2, kind: input, shape index: {}]   ;;  %s335_s3 = inlined_call_operand.vmem [shape: bf16[128,8], index: 3, kind: input, shape index: {}]   ;;  %s336_s4 = inlined_call_operand.vmem [shape: f32[1,8], index: 4, kind: input, shape index: {}]   ;;  %s337_s5 = inlined_call_operand.hbm [shape: f32[8,8], index: 5, kind: output, shape index: {}]  }
   0x1   :  { %v214_v0 = vld [vmem:[%s333_s1 + $0x8] sm:$0xff]  ;;  %v222_v1 = vld [vmem:[%s335_s3 + $0x38] sm:$0xff]  ;;  %v213_v2 = vld [vmem:[%s333_s1] sm:$0xff] }
   0x2   :  { %53 = vmatpush.bf16.msra.mxu0 %v214_v0  ;;  %130 = vmatpush.bf16.msra.mxu1 %v222_v1  ;;  %v221_v3 = vld [vmem:[%s335_s3 + $0x30] sm:$0xff] }
   0x3   :  { %10 = vsyncpa [#allocation3], 0  ;;  %v22_v4 = vld [vmem:[%s332_s0] sm:$0xf]  ;;  %vm43_vm0 = vcmask 261120   ;;  %v220_v5 = vld [vmem:[%s335_s3 + $0x28] sm:$0xff] }
   0x4   :  { %v219_v6 = vld [vmem:[%s335_s3 + $0x20] sm:$0xff]  ;;  %v218_v7 = vld [vmem:[%s335_s3 + $0x18] sm:$0xff]  ;;  %v217_v8 = vld [vmem:[%s335_s3 + $0x10] sm:$0xff]  ;;  %vm143_vm1 = vcmask 64512   ;;  %s163_s18 = sshll.u32 %s337_s5, 4  ;;  %s164_s18 = int_to_ptr.hbm [resolvable:$true] %s163_s18 }
   0x5   :  { %v216_v9 = vld [vmem:[%s335_s3 + $0x8] sm:$0xff]  ;;  %v215_v10 = vld [vmem:[%s335_s3] sm:$0xff] }
   0x6   :  { %54 = vmatpush.bf16.msra.mxu0 %v213_v2  ;;  %131 = vmatpush.bf16.msra.mxu1 %v221_v3  ;;  %v224_v11 = vld [vmem:[%s334_s2] ss:$0 sm:$0xff]  ;;  %s256_s2 = smov [#allocation2]  }
   0x7   :  { %v225_v17 = vld [vmem:[%s336_s4] ss:$0 sm:$0xff]  ;;  %s161_s3 = sshll.u32 %s256_s2, 4  ;;  %s162_s3 = int_to_ptr.vmem [resolvable:$true] %s161_s3 }
   0x9   :  { %180 = vmatmul.msk.bf16.vlgmr.msra.gmra.mxu0 %vm43_vm0, %v22_v4 }
   0xa   :  { %132 = vmatpush.bf16.msra.mxu1 %v220_v5 }
   0xe   :  { %133 = vmatpush.bf16.msra.mxu1 %v219_v6 }
  0x12   :  { %134 = vmatpush.bf16.msra.mxu1 %v218_v7 }
  0x16   :  { %135 = vmatpush.bf16.msra.mxu1 %v217_v8 }
  0x1a   :  { %136 = vmatpush.bf16.msra.mxu1 %v216_v9 }
  0x1e   :  { %137 = vmatpush.bf16.msra.mxu1 %v215_v10 }
  0x86   :  { %v56_v12 = vpop.f32.mrf.mxu0 }
  0x87   :  { %v57_v13 = vadd.f32 %v224_v11, %v56_v12 }
  0x89   :  { %v60_v14 = vmax.f32 %v57_v13, 0.0 }
  0x8b   :  { %v61_v15 = vpack.c.bf16 %v60_v14, %v60_v14 }
  0x8d   :  { %138 = vmatmul.bf16.vlgmr.msra.gmra.mxu1 %v61_v15 }
  0x8e   :  { %v58_v16 = vpop.f32.mrf.mxu0 }
 0x10a   :  { %v139_v18 = vpop.f32.mrf.mxu1 }
 0x10b   :  { %v140_v19 = vadd.f32 %v225_v17, %v139_v18 }
 0x10d   :  { %v144_v20 = vsel %vm143_vm1, %v140_v19, -inf }
 0x10e   :  { %145 = vmax.xlane.f32.xlu0 %v144_v20 }
 0x112   :  { %v141_v21 = vpop.f32.mrf.mxu1 }
 0x181   :  { %v146_v22 = vpop.xlane.xlu0 %145 }
 0x182   :  { %v147_v23 = vsub.f32 %v140_v19, %v146_v22 }
 0x184   :  { %v148_v24 = vmul.f32 1.442695, %v147_v23 }
 0x186   :  { %226 = vpow2.f32 %v148_v24 }
 0x18c   :  { %v227_v25 = vpop.eup %226 }
 0x18d   :  { %v150_v26 = vsel %vm143_vm1, %v227_v25, 0.0 }
 0x18e   :  { %151 = vadd.xlane.f32.xlu0 %v150_v26 }
 0x201   :  { %v152_v27 = vpop.xlane.xlu0 %151 }
 0x202   :  { %228 = vrcp.f32 %v152_v27 }
 0x208   :  { %v229_v28 = vpop.eup %228 }
 0x209   :  { %v154_v29 = vmul.f32 %v229_v28, %v227_v25 }
 0x20b   :  { %155 = vst.msk [vmem:[#allocation2] sm:$0xff] %vm143_vm1, %v154_v29 }
 0x20c   :  { %166 = dma.vmem_to_hbm [thread:$0]  %s162_s3, 128, %s164_s18, [#allocation3]  }
 0x20d   :  { %254 = dma.done.wait [#allocation3], 128  }
 0x20e   :  { %255 = vsyncadd [#allocation3], 4294967168 }
 0x20f   :  { %171 = vsyncpa [#allocation3], 1 }

</bundles_post_ra>
